<compile_context>
chip_gen: v7x
topology: tpu7x:2x2x1
jax: 0.10.0
libtpu: 0.0.40
codegen_flags: <defaults>
</compile_context>

<pallas_src>
import jax
import jax.numpy as jnp
from jax.experimental import pallas as pl
from jax.experimental.pallas import tpu as pltpu


def _round_up(x, m):
    return ((x + m - 1) // m) * m


# ---------------------------------------------------------------------------
# Kernels
# ---------------------------------------------------------------------------
def _temp_cls_kernel_multi_k(t_ref, x_ref, w_ref, b_ref, o_ref, acc_ref):
    # t_ref:   SMEM (1,)      f32 temperature
    # x_ref:   VMEM (TB, TK)  bf16 activation tile
    # w_ref:   VMEM (TK, TC)  bf16 pre-transposed weight tile
    # b_ref:   VMEM (1, TC)   f32 bias tile
    # o_ref:   VMEM (TB, TC)  output tile
    # acc_ref: VMEM (TB, TC)  f32 accumulator, resident across the K axis
    k = pl.program_id(2)

    @pl.when(k == 0)
    def _():
        # Fold the bias into the accumulator init: saves the epilogue add and
        # the per-tile b*inv_t recompute.
        acc_ref[...] = jnp.broadcast_to(b_ref[...], acc_ref.shape)

    acc_ref[...] += jnp.dot(
        x_ref[...], w_ref[...], preferred_element_type=jnp.float32
    )

    @pl.when(k == pl.num_programs(2) - 1)
    def _():
        inv_t = 1.0 / t_ref[0]  # scalar f32 reciprocal (v5e-safe)
        o_ref[...] = (acc_ref[...] * inv_t).astype(o_ref.dtype)


def _temp_cls_kernel_single_k(t_ref, x_ref, w_ref, b_ref, o_ref):
    # Single K step: skip the accumulator scratch (no zero-store / re-read).
    inv_t = 1.0 / t_ref[0]
    acc = jnp.dot(x_ref[...], w_ref[...], preferred_element_type=jnp.float32)
    o_ref[...] = ((acc + b_ref[...]) * inv_t).astype(o_ref.dtype)


# ---------------------------------------------------------------------------
# Wrapper
# ---------------------------------------------------------------------------
def temp_scaled_classifier(x_bf16, w_t_bf16, b, temp, *,
                           tb=256, tc=1024, tk=1024,
                           out_dtype=jnp.float32):
    """Fused (x @ W^T + b) / T.

    x_bf16:   [B, H]  bf16 activations
    w_t_bf16: [H, C]  bf16 classifier weight, stored pre-transposed (init-time)
    b:        [C]     f32 bias
    temp:     scalar  f32 temperature (output of get_temp)
    returns   [B, C]  out_dtype temperature-scaled logits
    """
    B, H = x_bf16.shape
    H2, C = w_t_bf16.shape
    assert H == H2

    # ---------------- tile selection ----------------
    if B <= tb:
        tb = B                                  # full-dim block: no x pad copy
        Bp = B
    else:
        tb = max(16, (tb // 16) * 16)           # bf16 sublane packing
        Bp = _round_up(B, tb)

    if H <= tk:
        tk = H                                  # full-dim K block
        Hp = H
    else:
        tk = max(128, (tk // 128) * 128)        # lane/sublane aligned K tile
        Hp = _round_up(H, tk)

    if C <= tc:
        tc = C                                  # full-dim C block
        Cp = C
    else:
        tc = max(128, (tc // 128) * 128)        # lane-dense C tile
        Cp = _round_up(C, tc)

    # v7x megacore: keep at least one "parallel" grid axis with extent >= 2
    # when the problem is large enough to split.
    if Bp // tb < 2 and Cp // tc < 2:
        if Cp % 256 == 0:
            tc = Cp // 2
        elif Bp % 32 == 0:
            tb = Bp // 2

    bt, ct, kt = Bp // tb, Cp // tc, Hp // tk

    # ---------------- operand prep (padding only as a fallback) -------------
    if (Bp, Hp) != (B, H):
        x_bf16 = jnp.pad(x_bf16, ((0, Bp - B), (0, Hp - H)))
    if (Hp, Cp) != (H, C):
        w_t_bf16 = jnp.pad(w_t_bf16, ((0, Hp - H), (0, Cp - C)))
    if Cp != C:
        b = jnp.pad(b, (0, Cp - C))

    b2d = b.reshape(1, Cp).astype(jnp.float32)
    t1d = jnp.asarray(temp, jnp.float32).reshape(1)

    out_bytes = jnp.dtype(out_dtype).itemsize

    # Truthful HBM traffic estimate: includes W / x tile re-reads.
    cost = pl.CostEstimate(
        flops=2 * Bp * Hp * Cp,
        transcendentals=0,
        bytes_accessed=(bt * Hp * Cp * 2        # W re-read once per batch tile
                        + ct * Bp * Hp * 2      # x re-read once per class tile
                        + Bp * Cp * out_bytes   # logits written once
                        + Cp * 4),              # bias
    )

    # VMEM budget: double-buffered x/out, 2-3 buffered W, f32 accumulator.
    w_bufs = 3 if kt >= 3 else 2
    tile_bytes = (2 * tb * tk * 2 + w_bufs * tk * tc * 2
                  + 2 * tb * tc * out_bytes + tb * tc * 4)
    vmem_limit = int(min(48 * 1024 * 1024,          # headroom under v7x 64 MiB
                         max(32 * 1024 * 1024, 2 * tile_bytes)))

    t_spec = pl.BlockSpec(memory_space=pltpu.SMEM)

    if kt == 1:
        # Single-K fast path: 2-D grid, no accumulator scratch.
        grid = (bt, ct)
        in_specs = [
            t_spec,
            pl.BlockSpec((tb, tk), lambda i, j: (i, 0)),
            pl.BlockSpec((tk, tc), lambda i, j: (0, j)),
            pl.BlockSpec((1, tc), lambda i, j: (0, j)),
        ]
        out_spec = pl.BlockSpec((tb, tc), lambda i, j: (i, j))
        kernel = _temp_cls_kernel_single_k
        scratch = []
        dims = ("parallel", "parallel")
    else:
        grid = (bt, ct, kt)
        w_index = lambda i, j, k: (k, j)
        if kt >= 3:
            try:
                # Deeper weight buffering keeps the K loop from stalling on the
                # W HBM stream in the memory-bound small-B / large-C regime.
                w_spec = pl.BlockSpec((tk, tc), w_index,
                                      pipeline_mode=pl.Buffered(3))
            except TypeError:   # older BlockSpec signature without pipeline_mode
                w_spec = pl.BlockSpec((tk, tc), w_index)
        else:
            w_spec = pl.BlockSpec((tk, tc), w_index)
        in_specs = [
            t_spec,
            pl.BlockSpec((tb, tk), lambda i, j, k: (i, k)),
            w_spec,
            pl.BlockSpec((1, tc), lambda i, j, k: (0, j)),
        ]
        out_spec = pl.BlockSpec((tb, tc), lambda i, j, k: (i, j))
        kernel = _temp_cls_kernel_multi_k
        scratch = [pltpu.VMEM((tb, tc), jnp.float32)]
        dims = ("parallel", "parallel", "arbitrary")

    out = pl.pallas_call(
        kernel,
        out_shape=jax.ShapeDtypeStruct((Bp, Cp), out_dtype),
        grid=grid,
        in_specs=in_specs,
        out_specs=out_spec,
        scratch_shapes=scratch,
        compiler_params=pltpu.CompilerParams(
            dimension_semantics=dims,
            vmem_limit_bytes=vmem_limit,
        ),
        cost_estimate=cost,
    )(t1d, x_bf16, w_t_bf16, b2d)

    if (Bp, Cp) != (B, C):
        out = out[:B, :C]
    return out


def _reference(x_bf16, w_t_bf16, b, temp):
    # Same bf16-input / f32-accumulate math as the kernel.
    return (jnp.dot(x_bf16, w_t_bf16, preferred_element_type=jnp.float32)
            + b.astype(jnp.float32)) / jnp.float32(temp)


if __name__ == "__main__":
    key = jax.random.PRNGKey(0)
    temperature = jnp.float32(1.5)   # learned scalar temperature (get_temp output)

    def make_case(k, B, H, C):
        kx, kw, kb = jax.random.split(k, 3)
        x = jax.random.normal(kx, (B, H), dtype=jnp.float32)
        # PyTorch Linear stores W as [C, H]; the persistent parameter here is
        # kept pre-transposed [H, C] and pre-cast to bf16 once at init time.
        w = jax.random.normal(kw, (C, H), dtype=jnp.float32) * 0.05
        b = jax.random.normal(kb, (C,), dtype=jnp.float32) * 0.01
        return x, w, b

    k1, k2, k3 = jax.random.split(key, 3)

    # Case 1: tiny head -> single-K fast path, full-dim tiles, no padding.
    x1, w1, b1 = make_case(k1, B=8, H=32, C=128)
    x1b, w1t = x1.astype(jnp.bfloat16), w1.T.astype(jnp.bfloat16)
    o1 = jax.block_until_ready(temp_scaled_classifier(x1b, w1t, b1, temperature))
    assert o1.shape == (8, 128)
    assert jnp.allclose(o1, _reference(x1b, w1t, b1, temperature),
                        atol=1e-4, rtol=1e-4)
    # Full-f32 module semantics, loose tolerance for bf16 inputs.
    assert jnp.allclose(o1, (x1 @ w1.T + b1) / temperature, atol=5e-2, rtol=5e-2)

    # Case 2: multi-tile grid with K accumulation (small tile overrides keep
    # shapes small while exercising the 3-D grid + f32 accumulator path).
    x2, w2, b2 = make_case(k2, B=384, H=512, C=1024)
    x2b, w2t = x2.astype(jnp.bfloat16), w2.T.astype(jnp.bfloat16)
    o2 = jax.block_until_ready(
        temp_scaled_classifier(x2b, w2t, b2, temperature, tb=128, tc=256, tk=256))
    assert o2.shape == (384, 1024)
    assert jnp.allclose(o2, _reference(x2b, w2t, b2, temperature),
                        atol=1e-4, rtol=1e-4)

    # Case 3: non-multiple batch (padding fallback) + bf16 logits output.
    x3, w3, b3 = make_case(k3, B=100, H=256, C=512)
    x3b, w3t = x3.astype(jnp.bfloat16), w3.T.astype(jnp.bfloat16)
    o3 = jax.block_until_ready(
        temp_scaled_classifier(x3b, w3t, b3, temperature, tb=64,
                               out_dtype=jnp.bfloat16))
    assert o3.shape == (100, 512) and o3.dtype == jnp.bfloat16
    assert jnp.allclose(o3.astype(jnp.float32),
                        _reference(x3b, w3t, b3, temperature),
                        atol=2e-2, rtol=2e-2)

    # TODO(synk): `calibrate` (NLL minimization over a held-out DataLoader) is a
    # training-time procedure with no forward-pass Pallas equivalent; omitted.
    print("KERNEL_OK")
</pallas_src>

<mosaic_0001>
module attributes {stable_mosaic.version = 11 : i64} {
  func.func @_temp_cls_kernel_single_k(%arg0: i32, %arg1: i32, %arg2: memref<1xf32, #tpu.memory_space<smem>>, %arg3: memref<8x32xbf16, #tpu.memory_space<vmem>>, %arg4: memref<32x128xbf16, #tpu.memory_space<vmem>>, %arg5: memref<1x128xf32, #tpu.memory_space<vmem>>, %arg6: memref<8x128xf32, #tpu.memory_space<vmem>>) attributes {dimension_semantics = [#tpu.dimension_semantics<parallel>, #tpu.dimension_semantics<parallel>], iteration_bounds = array<i64: 1, 1>, scalar_prefetch = 0 : i64, scratch_operands = 0 : i64, tpu.core_type = #tpu.core_type<tc>, window_params = [{transform_indices = @transform_0, window_bounds = array<i64: 1>}, {transform_indices = @transform_1, window_bounds = array<i64: 8, 32>}, {transform_indices = @transform_2, window_bounds = array<i64: 32, 128>}, {transform_indices = @transform_3, window_bounds = array<i64: 1, 128>}, {transform_indices = @transform_4, window_bounds = array<i64: 8, 128>}]} {
    %c0 = arith.constant 0 : index
    %0 = memref.load %arg2[%c0] : memref<1xf32, #tpu.memory_space<smem>>
    %cst = arith.constant 1.000000e+00 : f32
    %1 = arith.divf %cst, %0 : f32
    %c0_0 = arith.constant 0 : index
    %c0_1 = arith.constant 0 : index
    %2 = vector.load %arg3[%c0_0, %c0_1] : memref<8x32xbf16, #tpu.memory_space<vmem>>, vector<8x32xbf16>
    %c0_2 = arith.constant 0 : index
    %c0_3 = arith.constant 0 : index
    %3 = vector.load %arg4[%c0_2, %c0_3] : memref<32x128xbf16, #tpu.memory_space<vmem>>, vector<32x128xbf16>
    %cst_4 = arith.constant dense<0.000000e+00> : vector<8x128xf32>
    %4 = tpu.matmul %2, %3, %cst_4 {dimension_numbers = #tpu.dot_dimension_numbers<[1], [0], [0], [1], [0, 0, 1, 1], [], []>} : vector<8x32xbf16>, vector<32x128xbf16>, vector<8x128xf32> -> vector<8x128xf32>
    %c0_5 = arith.constant 0 : index
    %c0_6 = arith.constant 0 : index
    %5 = vector.load %arg5[%c0_5, %c0_6] : memref<1x128xf32, #tpu.memory_space<vmem>>, vector<1x128xf32>
    %6 = vector.broadcast %5 : vector<1x128xf32> to vector<8x128xf32>
    %7 = arith.addf %4, %6 : vector<8x128xf32>
    %8 = vector.broadcast %1 : f32 to vector<8x128xf32>
    %9 = arith.mulf %7, %8 : vector<8x128xf32>
    %c0_7 = arith.constant 0 : index
    %c0_8 = arith.constant 0 : index
    %10 = vector.load %arg6[%c0_7, %c0_8] : memref<8x128xf32, #tpu.memory_space<vmem>>, vector<8x128xf32>
    tpu.vector_store %arg6[%c0_7, %c0_8], %9 {strides = array<i32>} : memref<8x128xf32, #tpu.memory_space<vmem>>, vector<8x128xf32>,
    return
  }
  func.func @transform_0(%arg0: i32, %arg1: i32) -> i32 {
    %c0_i32 = arith.constant 0 : i32
    %c0_i32_0 = arith.constant 0 : i32
    return %c0_i32 : i32
  }
  func.func @transform_1(%arg0: i32, %arg1: i32) -> (i32, i32) {
    %c0_i32 = arith.constant 0 : i32
    %c0_i32_0 = arith.constant 0 : i32
    return %arg0, %c0_i32 : i32, i32
  }
  func.func @transform_2(%arg0: i32, %arg1: i32) -> (i32, i32) {
    %c0_i32 = arith.constant 0 : i32
    %c0_i32_0 = arith.constant 0 : i32
    return %c0_i32, %arg1 : i32, i32
  }
  func.func @transform_3(%arg0: i32, %arg1: i32) -> (i32, i32) {
    %c0_i32 = arith.constant 0 : i32
    %c0_i32_0 = arith.constant 0 : i32
    return %c0_i32, %arg1 : i32, i32
  }
  func.func @transform_4(%arg0: i32, %arg1: i32) -> (i32, i32) {
    %c0_i32 = arith.constant 0 : i32
    return %arg0, %arg1 : i32, i32
  }
}

</mosaic_0001>

<bundles_post_ra>
// kernel: tpu_custom_call.1
= control target key start
LH: loop header
LB: loop body
LE: loop exit
PB: predicated region body
PF: predicated region fallthrough
CT: control target
= control target key end

     0   :  { %10 = vsyncpa [#allocation4], 0  ;;  %s318_s0 = inlined_call_operand.<no memory space> [shape: f32[1], index: 0, kind: input, shape index: {}]   ;;  %s319_s1 = inlined_call_operand.hbm [shape: bf16[8,32], index: 1, kind: input, shape index: {}]   ;;  %s320_s2 = inlined_call_operand.hbm [shape: bf16[32,128], index: 2, kind: input, shape index: {}]   ;;  %s321_s3 = inlined_call_operand.vmem [shape: f32[1,128], index: 3, kind: input, shape index: {}]   ;;  %s322_s4 = inlined_call_operand.hbm [shape: f32[8,128], index: 4, kind: output, shape index: {}]  }
   0x1   :  { %11 = vsyncpa [#allocation7], 0 }
   0x2   :  { %12 = vsyncpa [#allocation5], 0  ;;  %s237_s15 = smov [#allocation3]   ;;  %s238_s17 = smov [#allocation6]  }
   0x3   :  { %s21_s16 = sshll.u32 %s237_s15, 4  ;;  %s30_s18 = sshll.u32 %s238_s17, 4  ;;  %s22_s16 = int_to_ptr.vmem [resolvable:$true] %s21_s16  ;;  %s269_s18 = int_to_ptr.vmem [resolvable:$true] %s30_s18 }
   0x4   :  { %s165_s21 = scalar_lea.hbm %s319_s1, 64 }
   0x5   :  { %p166_p0 = scmp.ne.s32.totalorder %s319_s1, %s165_s21  ;;  %p169_p1 = scmp.lt.u32.totalorder %s165_s21, %s319_s1 }
   0x7   :  { %p171_p2 = pnand %p169_p1, %p166_p0 }
   0x9   :  { %174 = shalt.err (!%p171_p2)
}
   0xa   :  { %s175_s26 = scalar_lea.vmem %s22_s16, 64  ;;  %p180_p4 = scmp.lt.s32.totalorder %s22_s16, %s22_s16 }
   0xb   :  { %p176_p3 = scmp.ne.s32.totalorder %s22_s16, %s175_s26  ;;  %p181_p5 = scmp.lt.s32.totalorder %s175_s26, %s175_s26 }
   0xd   :  { %p182_p6 = por %p181_p5, %p180_p4 }
   0xf   :  { %p183_p7 = pnand %p182_p6, %p176_p3 }
  0x11   :  { %186 = shalt.err (!%p183_p7)
}
  0x12   :  { %24 = dma.hbm_to_vmem [thread:$0]  %s319_s1, 64, %s22_s16, [#allocation4]  }
  0x13   :  { %s187_s5 = scalar_lea.hbm %s320_s2, 256 }
  0x14   :  { %p188_p8 = scmp.ne.s32.totalorder %s320_s2, %s187_s5  ;;  %p191_p9 = scmp.lt.u32.totalorder %s187_s5, %s320_s2 }
  0x16   :  { %p193_p10 = pnand %p191_p9, %p188_p8 }
  0x18   :  { %196 = shalt.err (!%p193_p10)
}
  0x19   :  { %s197_s10 = scalar_lea.vmem %s269_s18, 256  ;;  %p202_p12 = scmp.lt.s32.totalorder %s269_s18, %s269_s18 }
  0x1a   :  { %p198_p11 = scmp.ne.s32.totalorder %s269_s18, %s197_s10  ;;  %p203_p13 = scmp.lt.s32.totalorder %s197_s10, %s197_s10 }
  0x1c   :  { %p204_p0 = por %p203_p13, %p202_p12 }
  0x1e   :  { %p205_p1 = pnand %p204_p0, %p198_p11 }
  0x20   :  { %208 = shalt.err (!%p205_p1)
}
  0x21   :  { %s239_s1 = smov 64   ;;  %s240_s11 = smov 4  }
  0x22   :  { %36 = dma.hbm_to_vmem [thread:$0]  %s320_s2, 256, %s269_s18, [#allocation7], %s239_s1, %s239_s1, %s240_s11  }
  0x23   :  { %231 = dma.done.wait [#allocation4], 64  }
  0x24   :  { %232 = vsyncadd [#allocation4], 4294967232 }
  0x25   :  { %233 = dma.done.wait [#allocation7], 256  }
  0x26   :  { %234 = vsyncadd [#allocation7], 4294967040  ;;  %v47_v0 = vstv %s318_s0  ;;  %v241_v1 = vmov 0.0   ;;  %vm242_vm0 = vmmov 0   ;;  %v161_v2 = vld [vmem:[#allocation6] sm:$0xff]   ;;  %v162_v3 = vld [vmem:[#allocation6 + $0x8] sm:$0xff]  }
  0x27   :  { %144 = vmatprep.subr.bf16.mxu0 %v241_v1  ;;  %148 = vmatprep.mubr.msk.bf16.mxu0 %vm242_vm0, %v241_v1  ;;  %163 = vrcp.f32 %v47_v0  ;;  %v50_v5 = vld [vmem:[#allocation3] sm:$0xf]  ;;  %vm74_vm1 = vcmask 261120   ;;  %s243_s0 = smov [#allocation8]  }
  0x28   :  { %145 = vmatpush3.bf16.msra.mxu0 %v161_v2  ;;  %v137_v6 = vld [vmem:[%s321_s3] ss:$0 sm:$0xff]  ;;  %s127_s18 = sshll.u32 %s243_s0, 4  ;;  %s128_s18 = int_to_ptr.vmem [resolvable:$true] %s127_s18 }
  0x29   :  { %146 = vmatprep.subr.bf16.mxu0 %v241_v1  ;;  %s209_s19 = scalar_lea.vmem %s128_s18, 128  ;;  %p214_p3 = scmp.lt.s32.totalorder %s128_s18, %s128_s18 }
  0x2a   :  { %p210_p2 = scmp.ne.s32.totalorder %s128_s18, %s209_s19  ;;  %p215_p4 = scmp.lt.s32.totalorder %s209_s19, %s209_s19 }
  0x2c   :  { %147 = vmatpush3.bf16.msra.mxu0 %v162_v3  ;;  %p216_p5 = por %p215_p4, %p214_p3 }
  0x2e   :  { %p217_p6 = pnand %p216_p5, %p210_p2 }
  0x2f   :  { %149 = vmatmul.mubr.msk.bf16.vlgmr.msra.gmra.mrb[0].mxu0 %vm74_vm1, %v50_v5 }
  0x31   :  { %v164_v4 = vpop.eup %163 }
  0x32   :  { %152 = vpush %v164_v4 }
  0x63   :  { %s153_s2 = spop %152 }
  0x64   :  { %v118_v8 = vstv %s153_s2 }
 0x102   :  { %v112_v7 = vpop.f32.mrb[0].mxu0 }
 0x103   :  { %v113_v9 = vadd.f32 %v137_v6, %v112_v7  ;;  %v150_v10 = vpop.f32.mrb[1].mxu0 }
 0x104   :  { %v115_v11 = vpop.f32.mrb[2].mxu0 }
 0x105   :  { %v119_v12 = vmul.f32 %v118_v8, %v113_v9  ;;  %v151_v13 = vpop.f32.mrb[3].mxu0 }
 0x107   :  { %120 = vst [vmem:[#allocation8] sm:$0xff] %v119_v12 }
 0x108   :  { %220 = shalt.err (!%p217_p6)
}
 0x109   :  { %s221_s21 = scalar_lea.hbm %s322_s4, 128 }
 0x10a   :  { %p222_p7 = scmp.ne.s32.totalorder %s322_s4, %s221_s21  ;;  %p225_p8 = scmp.lt.u32.totalorder %s221_s21, %s322_s4 }
 0x10c   :  { %p227_p9 = pnand %p225_p8, %p222_p7 }
 0x10e   :  { %230 = shalt.err (!%p227_p9)
}
 0x10f   :  { %130 = dma.vmem_to_hbm [thread:$0]  %s128_s18, 128, %s322_s4, [#allocation5]  }
 0x110   :  { %235 = dma.done.wait [#allocation5], 128  }
 0x111   :  { %236 = vsyncadd [#allocation5], 4294967168 }
 0x112   :  { %134 = vsyncpa [#allocation4], 1 }
 0x113   :  { %135 = vsyncpa [#allocation7], 1 }
 0x114   :  { %136 = vsyncpa [#allocation5], 1 }

</bundles_post_ra>
